<compile_context>
chip_gen: v6e
topology: v6e:2x2x1
jax: 0.10.0
libtpu: 0.0.40
codegen_flags: <defaults>
</compile_context>

<pallas_src>
import functools

import jax
import jax.numpy as jnp
import numpy as np
from jax.experimental import pallas as pl
from jax.experimental.pallas import tpu as pltpu


# ----------------------------------------------------------------------------- kernel
def _temporal_block_kernel(x_ref, w1_ref, b1_ref, w2_ref, b2_ref, *rest,
                           TL, PH, Q, K, D, use_downsample):
    """One (batch, time-tile) per grid step.  Channel-major layout.

    x_ref  : (1, Cin, TL)       input tile in original dtype (f32), NCW layout
    w1_ref : (K, Cout, Cin)     conv1 weight, tap-major (weight-normed, bf16)
    b1_ref : (Cout, 1)          f32
    w2_ref : (K, Cout, Cout)    conv2 weight, tap-major (bf16)
    b2_ref : (Cout, 1)          f32
    [wd_ref: (Cout, Cin), bd_ref: (Cout, 1)]    only if use_downsample
    o_ref  : (1, Cout, TL)      bf16 output tile
    xbuf   : VMEM (Cin,  PH+TL) bf16: [lane-aligned causal halo | current tile]
    h1buf  : VMEM (Cout, PH+TL) bf16: same for conv1's output

    PH = round_up(P, 128) (halo region width, lane aligned), Q = PH - P.
    Window column Q + t corresponds to time (tile_start - P + t).
    """
    if use_downsample:
        wd_ref, bd_ref, o_ref, xbuf, h1buf = rest
    else:
        o_ref, xbuf, h1buf = rest

    Cin = xbuf.shape[0]
    Cout = h1buf.shape[0]

    # t == 0: zero the causal halo (== the (k-1)*dilation left zero padding).
    @pl.when(pl.program_id(1) == 0)
    def _():
        xbuf[:, 0:PH] = jnp.zeros((Cin, PH), xbuf.dtype)
        h1buf[:, 0:PH] = jnp.zeros((Cout, PH), h1buf.dtype)

    x_f32 = x_ref[0].astype(jnp.float32)            # (Cin, TL) exact input
    x_bf = x_f32.astype(xbuf.dtype)
    xbuf[:, PH:PH + TL] = x_bf                      # 128-lane-aligned store
    x_win = xbuf[...]                               # (Cin, PH + TL)

    # ---- conv1: K dilation taps as K accumulating channel-major MXU dots -------
    # (output width TL keeps the 256-wide MXU output columns full; no im2col temp)
    acc = jnp.dot(w1_ref[0], x_win[:, Q:Q + TL],
                  preferred_element_type=jnp.float32)
    for j in range(1, K):
        acc = acc + jnp.dot(w1_ref[j], x_win[:, Q + j * D:Q + j * D + TL],
                            preferred_element_type=jnp.float32)
    h1 = jnp.maximum(acc + b1_ref[...], 0.0)        # (Cout, TL) f32
    # TODO(synk): dropout1 (p=0.2) omitted — identity in eval/inference mode.

    h1buf[:, PH:PH + TL] = h1.astype(h1buf.dtype)   # aligned store (needed for taps+carry)
    h_win = h1buf[...]                              # (Cout, PH + TL)

    # ---- conv2 -------------------------------------------------------------------
    acc = jnp.dot(w2_ref[0], h_win[:, Q:Q + TL],
                  preferred_element_type=jnp.float32)
    for j in range(1, K):
        acc = acc + jnp.dot(w2_ref[j], h_win[:, Q + j * D:Q + j * D + TL],
                            preferred_element_type=jnp.float32)
    h2 = jnp.maximum(acc + b2_ref[...], 0.0)        # (Cout, TL) f32
    # TODO(synk): dropout2 (p=0.2) omitted — identity in eval/inference mode.

    # ---- residual + final relu (f32 epilogue, lane-dense bf16 store) ---------------
    if use_downsample:
        res = jnp.dot(wd_ref[...], x_bf,
                      preferred_element_type=jnp.float32) + bd_ref[...]
    else:
        res = x_f32                                 # exact f32 skip (Cin == Cout)
    o_ref[0] = jnp.maximum(h2 + res, 0.0).astype(o_ref.dtype)

    # Carry: last PH timesteps become the next tile's causal halo (aligned stores).
    xbuf[:, 0:PH] = x_win[:, TL:TL + PH]
    h1buf[:, 0:PH] = h_win[:, TL:TL + PH]


# ----------------------------------------------------------------------------- wrapper
def _round_up(x, m):
    return ((x + m - 1) // m) * m


def _vmem_capacity_bytes():
    try:
        return int(pltpu.get_tpu_info().vmem_capacity_bytes)
    except Exception:
        return 64 << 20          # worst case (v7x per-TC physical VMEM)


def temporal_block_forward(x_ncw, params, *, kernel_size, dilation, padding,
                           time_tile=512, compute_dtype=jnp.bfloat16,
                           out_dtype=jnp.bfloat16):
    """x_ncw: (B, Cin, L), PyTorch NCW layout.  Returns (B, Cout, L) in out_dtype
    (bf16 by default — cast in the consumer if f32 is required)."""
    assert padding == (kernel_size - 1) * dilation and padding >= 1, \
        "TCN residual block requires padding == (k-1)*dilation >= 1"
    B, Cin, L = x_ncw.shape
    K, D, P = kernel_size, dilation, padding

    w1, b1 = params["w1"], params["b1"]            # (Cout, Cin, K), (Cout,)
    w2, b2 = params["w2"], params["b2"]            # (Cout, Cout, K), (Cout,)
    use_downsample = ("wd" in params) and (params["wd"] is not None)
    Cout = w1.shape[0]
    assert use_downsample or Cin == Cout

    # Time tile = minor (lane) dim of every activation block: multiple of 128 when
    # tiled, or the full length for a single tile.  Bigger tiles amortize the
    # ~0.35 us per-grid-step overhead.
    if L <= time_tile:
        TL, Lp = L, L
    else:
        TL = max(128, (min(time_tile, L) // 128) * 128)
        Lp = _round_up(L, TL)
    n_t = Lp // TL
    PH = _round_up(P, 128)            # lane-aligned halo region in scratch
    Q = PH - P                        # first "real" halo column

    # Only wrapper-side data movement: optional zero time-padding of x.
    x_in = x_ncw if Lp == L else jnp.pad(x_ncw, ((0, 0), (0, 0), (0, Lp - L)))

    # Tap-major weights (K, Cout, Cin): kernel takes contiguous per-tap slices.
    W1 = jnp.transpose(w1, (2, 0, 1)).astype(compute_dtype)     # (K, Cout, Cin)
    W2 = jnp.transpose(w2, (2, 0, 1)).astype(compute_dtype)     # (K, Cout, Cout)
    B1 = b1.reshape(Cout, 1).astype(jnp.float32)
    B2 = b2.reshape(Cout, 1).astype(jnp.float32)

    operands = [x_in, W1, B1, W2, B2]
    # NOTE: constant-index weight specs are still double-buffered by the pipeline;
    # pl.Buffered(1) would single-buffer them (VMEM saver for very large channels).
    in_specs = [
        pl.BlockSpec((1, Cin, TL), lambda b, t: (b, 0, t)),
        pl.BlockSpec((K, Cout, Cin), lambda b, t: (0, 0, 0)),
        pl.BlockSpec((Cout, 1), lambda b, t: (0, 0)),
        pl.BlockSpec((K, Cout, Cout), lambda b, t: (0, 0, 0)),
        pl.BlockSpec((Cout, 1), lambda b, t: (0, 0)),
    ]
    if use_downsample:
        Wd = params["wd"][:, :, 0].astype(compute_dtype)        # (Cout, Cin)
        Bd = params["bd"].reshape(Cout, 1).astype(jnp.float32)
        operands += [Wd, Bd]
        in_specs += [pl.BlockSpec((Cout, Cin), lambda b, t: (0, 0)),
                     pl.BlockSpec((Cout, 1), lambda b, t: (0, 0))]

    kernel = functools.partial(_temporal_block_kernel, TL=TL, PH=PH, Q=Q, K=K, D=D,
                               use_downsample=use_downsample)

    # ---- VMEM budget (incl. double-buffered weights, tap temporaries, f32 acc) ----
    cd = jnp.dtype(compute_dtype).itemsize
    in_sz = jnp.dtype(x_ncw.dtype).itemsize
    out_sz = jnp.dtype(out_dtype).itemsize
    est = (2 * Cin * TL * in_sz                                      # x blocks (x2)
           + 2 * Cout * TL * out_sz                                  # out blocks (x2)
           + 2 * (K * Cout * (Cin + Cout)
                  + (Cin * Cout if use_downsample else 0)) * cd      # weights (x2)
           + 2 * 3 * Cout * 4                                        # biases (x2)
           + (Cin + Cout) * (PH + TL) * cd                           # halo scratch
           + 2 * K * max(Cin, Cout) * TL * cd                        # tap-slice temps
           + 4 * Cout * TL * 4 + Cin * TL * 4)                       # f32 acc/h/res/x
    vmem_needed = int(1.5 * est)
    vmem_limit = None
    if vmem_needed > (16 << 20):                    # only raise beyond scoped default
        vmem_limit = min(max(vmem_needed, 32 << 20),
                         int(0.8 * _vmem_capacity_bytes()))          # keep headroom

    flops = 2 * B * Lp * K * (Cin + Cout) * Cout
    if use_downsample:
        flops += 2 * B * Lp * Cin * Cout
    bytes_accessed = (B * Cin * Lp * in_sz + B * Cout * Lp * out_sz
                      + (K * Cout * (Cin + Cout)
                         + (Cin * Cout if use_downsample else 0)) * cd
                      + 3 * Cout * 4)

    out_pad = pl.pallas_call(
        kernel,
        out_shape=jax.ShapeDtypeStruct((B, Cout, Lp), out_dtype),
        grid_spec=pltpu.PrefetchScalarGridSpec(
            num_scalar_prefetch=0,
            grid=(B, n_t),
            in_specs=in_specs,
            out_specs=pl.BlockSpec((1, Cout, TL), lambda b, t: (b, 0, t)),
            scratch_shapes=[pltpu.VMEM((Cin, PH + TL), compute_dtype),
                            pltpu.VMEM((Cout, PH + TL), compute_dtype)],
        ),
        compiler_params=pltpu.CompilerParams(
            dimension_semantics=("parallel", "arbitrary"),
            vmem_limit_bytes=vmem_limit),
        cost_estimate=pl.CostEstimate(flops=flops, transcendentals=0,
                                      bytes_accessed=bytes_accessed),
    )(*operands)

    return out_pad if Lp == L else out_pad[:, :, :L]


# ----------------------------------------------------------------------------- params
def _weight_norm(v, g):
    """PyTorch weight_norm (dim=0): w = g * v / ||v||, norm over all dims but 0."""
    norm = jnp.sqrt(jnp.sum(v * v, axis=tuple(range(1, v.ndim)), keepdims=True))
    return g.reshape((-1,) + (1,) * (v.ndim - 1)) * v / norm


def make_params(key, n_inputs, n_outputs, kernel_size, sigma=100.0):
    ks = jax.random.split(key, 8)
    v1 = sigma * jax.random.normal(ks[0], (n_outputs, n_inputs, kernel_size), jnp.float32)
    v2 = sigma * jax.random.normal(ks[1], (n_outputs, n_outputs, kernel_size), jnp.float32)
    # g initialized to ||v|| (weight_norm default) => effective weight == v
    g1 = jnp.sqrt(jnp.sum(v1 * v1, axis=(1, 2)))
    g2 = jnp.sqrt(jnp.sum(v2 * v2, axis=(1, 2)))
    params = {
        "w1": _weight_norm(v1, g1),
        "b1": 0.5 * jax.random.normal(ks[2], (n_outputs,), jnp.float32),
        "w2": _weight_norm(v2, g2),
        "b2": 0.5 * jax.random.normal(ks[3], (n_outputs,), jnp.float32),
    }
    if n_inputs != n_outputs:
        params["wd"] = sigma * jax.random.normal(ks[4], (n_outputs, n_inputs, 1), jnp.float32)
        params["bd"] = 0.5 * jax.random.normal(ks[5], (n_outputs,), jnp.float32)
    return params


# ----------------------------------------------------------------------------- reference
def ref_forward(x, params, *, kernel_size, dilation, padding):
    """Pure-JAX reference with PyTorch Conv1d semantics (NCW), f32 HIGHEST."""
    def conv1d(inp, w, b):
        out = jax.lax.conv_general_dilated(
            inp, w, window_strides=(1,), padding=[(padding, padding)],
            rhs_dilation=(dilation,), dimension_numbers=("NCH", "OIH", "NCH"),
            precision=jax.lax.Precision.HIGHEST)
        return out + b[None, :, None]

    h = jax.nn.relu(conv1d(x, params["w1"], params["b1"])[:, :, :-padding])
    h = jax.nn.relu(conv1d(h, params["w2"], params["b2"])[:, :, :-padding])
    if "wd" in params:
        res = jnp.einsum("oc,bcl->bol", params["wd"][:, :, 0], x,
                         precision=jax.lax.Precision.HIGHEST) \
              + params["bd"][None, :, None]
    else:
        res = x
    return jax.nn.relu(h + res)


# ----------------------------------------------------------------------------- main
if __name__ == "__main__":
    configs = [
        # single time tile, downsample residual (Cin != Cout)
        dict(B=2, Cin=4, Cout=8, L=16, K=3, D=2, time_tile=512),
        # 3 time tiles (TL=128): exercises the carried halo + time padding/slice
        dict(B=2, Cin=8, Cout=8, L=300, K=3, D=2, time_tile=128),
        # 2 time tiles, downsample, odd channel counts, P=1
        dict(B=1, Cin=6, Cout=4, L=256, K=2, D=1, time_tile=128),
    ]
    key = jax.random.PRNGKey(0)
    for cfg in configs:
        B, Cin, Cout, L, K, D = (cfg[k] for k in ("B", "Cin", "Cout", "L", "K", "D"))
        P = (K - 1) * D
        key, kx, kp = jax.random.split(key, 3)
        x = jax.random.normal(kx, (B, Cin, L), jnp.float32)
        # NOTE: module init uses sigma=100; weight_norm makes the effective weight
        # equal to v, so sigma=1 keeps the bf16-kernel vs f32-reference comparison
        # well conditioned without changing the forward semantics being tested.
        params = make_params(kp, Cin, Cout, K, sigma=1.0)

        out = temporal_block_forward(x, params, kernel_size=K, dilation=D,
                                     padding=P, time_tile=cfg["time_tile"])
        out = jax.block_until_ready(out)
        out_f32 = np.asarray(jnp.asarray(out, jnp.float32))
        ref = np.asarray(ref_forward(x, params, kernel_size=K, dilation=D, padding=P))

        assert out_f32.shape == ref.shape, (out_f32.shape, ref.shape)
        err = float(np.max(np.abs(out_f32 - ref)))
        tol = 3e-2 * float(np.max(np.abs(ref))) + 1e-2   # bf16 operand+output tolerance
        assert err <= tol, f"cfg={cfg}: max|err|={err} > tol={tol}"
    print("KERNEL_OK")
</pallas_src>

<mosaic_0001>
module attributes {stable_mosaic.version = 11 : i64} {
  func.func @_temporal_block_kernel(%arg0: i32, %arg1: i32, %arg2: memref<1x4x16xf32, #tpu.memory_space<vmem>>, %arg3: memref<3x8x4xbf16, #tpu.memory_space<vmem>>, %arg4: memref<8x1xf32, #tpu.memory_space<vmem>>, %arg5: memref<3x8x8xbf16, #tpu.memory_space<vmem>>, %arg6: memref<8x1xf32, #tpu.memory_space<vmem>>, %arg7: memref<8x4xbf16, #tpu.memory_space<vmem>>, %arg8: memref<8x1xf32, #tpu.memory_space<vmem>>, %arg9: memref<1x8x16xbf16, #tpu.memory_space<vmem>>, %arg10: memref<4x144xbf16, #tpu.memory_space<vmem>>, %arg11: memref<8x144xbf16, #tpu.memory_space<vmem>>) attributes {dimension_semantics = [#tpu.dimension_semantics<parallel>, #tpu.dimension_semantics<arbitrary>], iteration_bounds = array<i64: 2, 1>, scalar_prefetch = 0 : i64, scratch_operands = 2 : i64, tpu.core_type = #tpu.core_type<tc>, window_params = [{transform_indices = @transform_0, window_bounds = array<i64: 1, 4, 16>}, {pipeline_mode = #tpu.pipeline_mode<synchronous>, transform_indices = @transform_1, window_bounds = array<i64: 3, 8, 4>}, {pipeline_mode = #tpu.pipeline_mode<synchronous>, transform_indices = @transform_2, window_bounds = array<i64: 8, 1>}, {pipeline_mode = #tpu.pipeline_mode<synchronous>, transform_indices = @transform_3, window_bounds = array<i64: 3, 8, 8>}, {pipeline_mode = #tpu.pipeline_mode<synchronous>, transform_indices = @transform_4, window_bounds = array<i64: 8, 1>}, {pipeline_mode = #tpu.pipeline_mode<synchronous>, transform_indices = @transform_5, window_bounds = array<i64: 8, 4>}, {pipeline_mode = #tpu.pipeline_mode<synchronous>, transform_indices = @transform_6, window_bounds = array<i64: 8, 1>}, {transform_indices = @transform_7, window_bounds = array<i64: 1, 8, 16>}]} {
    %c0_i32 = arith.constant 0 : i32
    %0 = arith.cmpi eq, %arg1, %c0_i32 : i32
    %1 = arith.extui %0 : i1 to i32
    %c0_i32_0 = arith.constant 0 : i32
    %2 = arith.cmpi ne, %1, %c0_i32_0 : i32
    scf.if %2 {
      %cst_50 = arith.constant 0.000000e+00 : bf16
      %65 = vector.broadcast %cst_50 : bf16 to vector<4x128xbf16>
      %c0_51 = arith.constant 0 : index
      %c0_52 = arith.constant 0 : index
      %66 = vector.load %arg10[%c0_51, %c0_52] : memref<4x144xbf16, #tpu.memory_space<vmem>>, vector<4x128xbf16>
      tpu.vector_store %arg10[%c0_51, %c0_52], %65 {strides = array<i32>} : memref<4x144xbf16, #tpu.memory_space<vmem>>, vector<4x128xbf16>,
      %cst_53 = arith.constant 0.000000e+00 : bf16
      %67 = vector.broadcast %cst_53 : bf16 to vector<8x128xbf16>
      %c0_54 = arith.constant 0 : index
      %c0_55 = arith.constant 0 : index
      %68 = vector.load %arg11[%c0_54, %c0_55] : memref<8x144xbf16, #tpu.memory_space<vmem>>, vector<8x128xbf16>
      tpu.vector_store %arg11[%c0_54, %c0_55], %67 {strides = array<i32>} : memref<8x144xbf16, #tpu.memory_space<vmem>>, vector<8x128xbf16>,
    } else {
    }
    %c0 = arith.constant 0 : index
    %c0_1 = arith.constant 0 : index
    %c0_2 = arith.constant 0 : index
    %3 = vector.load %arg2[%c0, %c0_1, %c0_2] : memref<1x4x16xf32, #tpu.memory_space<vmem>>, vector<1x4x16xf32>
    %4 = vector.shape_cast %3 : vector<1x4x16xf32> to vector<4x16xf32>
    %5 = arith.truncf %4 : vector<4x16xf32> to vector<4x16xbf16>
    %c0_3 = arith.constant 0 : index
    %c128 = arith.constant 128 : index
    %6 = vector.load %arg10[%c0_3, %c128] : memref<4x144xbf16, #tpu.memory_space<vmem>>, vector<4x16xbf16>
    tpu.vector_store %arg10[%c0_3, %c128], %5 {strides = array<i32>} : memref<4x144xbf16, #tpu.memory_space<vmem>>, vector<4x16xbf16>,
    %c0_4 = arith.constant 0 : index
    %c0_5 = arith.constant 0 : index
    %7 = vector.load %arg10[%c0_4, %c0_5] : memref<4x144xbf16, #tpu.memory_space<vmem>>, vector<4x144xbf16>
    %c0_6 = arith.constant 0 : index
    %c0_7 = arith.constant 0 : index
    %c0_8 = arith.constant 0 : index
    %8 = vector.load %arg3[%c0_6, %c0_7, %c0_8] : memref<3x8x4xbf16, #tpu.memory_space<vmem>>, vector<1x8x4xbf16>
    %9 = vector.shape_cast %8 : vector<1x8x4xbf16> to vector<8x4xbf16>
    %10 = vector.extract_strided_slice %7 {offsets = [0, 124], sizes = [4, 16], strides = [1, 1]} : vector<4x144xbf16> to vector<4x16xbf16>
    %cst = arith.constant dense<0.000000e+00> : vector<8x16xf32>
    %11 = tpu.matmul %9, %10, %cst {dimension_numbers = #tpu.dot_dimension_numbers<[1], [0], [0], [1], [0, 0, 1, 1], [], []>} : vector<8x4xbf16>, vector<4x16xbf16>, vector<8x16xf32> -> vector<8x16xf32>
    %c1 = arith.constant 1 : index
    %c0_9 = arith.constant 0 : index
    %c0_10 = arith.constant 0 : index
    %12 = vector.load %arg3[%c1, %c0_9, %c0_10] : memref<3x8x4xbf16, #tpu.memory_space<vmem>>, vector<1x8x4xbf16>
    %13 = vector.shape_cast %12 : vector<1x8x4xbf16> to vector<8x4xbf16>
    %14 = vector.extract_strided_slice %7 {offsets = [0, 126], sizes = [4, 16], strides = [1, 1]} : vector<4x144xbf16> to vector<4x16xbf16>
    %cst_11 = arith.constant dense<0.000000e+00> : vector<8x16xf32>
    %15 = tpu.matmul %13, %14, %cst_11 {dimension_numbers = #tpu.dot_dimension_numbers<[1], [0], [0], [1], [0, 0, 1, 1], [], []>} : vector<8x4xbf16>, vector<4x16xbf16>, vector<8x16xf32> -> vector<8x16xf32>
    %16 = arith.addf %11, %15 : vector<8x16xf32>
    %c2 = arith.constant 2 : index
    %c0_12 = arith.constant 0 : index
    %c0_13 = arith.constant 0 : index
    %17 = vector.load %arg3[%c2, %c0_12, %c0_13] : memref<3x8x4xbf16, #tpu.memory_space<vmem>>, vector<1x8x4xbf16>
    %18 = vector.shape_cast %17 : vector<1x8x4xbf16> to vector<8x4xbf16>
    %19 = vector.extract_strided_slice %7 {offsets = [0, 128], sizes = [4, 16], strides = [1, 1]} : vector<4x144xbf16> to vector<4x16xbf16>
    %cst_14 = arith.constant dense<0.000000e+00> : vector<8x16xf32>
    %20 = tpu.matmul %18, %19, %cst_14 {dimension_numbers = #tpu.dot_dimension_numbers<[1], [0], [0], [1], [0, 0, 1, 1], [], []>} : vector<8x4xbf16>, vector<4x16xbf16>, vector<8x16xf32> -> vector<8x16xf32>
    %21 = arith.addf %16, %20 : vector<8x16xf32>
    %c0_15 = arith.constant 0 : index
    %c0_16 = arith.constant 0 : index
    %22 = vector.load %arg4[%c0_15, %c0_16] : memref<8x1xf32, #tpu.memory_space<vmem>>, vector<8x1xf32>
    %23 = vector.broadcast %22 : vector<8x1xf32> to vector<8x16xf32>
    %24 = arith.addf %21, %23 : vector<8x16xf32>
    %cst_17 = arith.constant 0.000000e+00 : f32
    %25 = vector.broadcast %cst_17 : f32 to vector<8x16xf32>
    %26 = arith.maximumf %24, %25 : vector<8x16xf32>
    %27 = arith.truncf %26 : vector<8x16xf32> to vector<8x16xbf16>
    %c0_18 = arith.constant 0 : index
    %c128_19 = arith.constant 128 : index
    %28 = vector.load %arg11[%c0_18, %c128_19] : memref<8x144xbf16, #tpu.memory_space<vmem>>, vector<8x16xbf16>
    tpu.vector_store %arg11[%c0_18, %c128_19], %27 {strides = array<i32>} : memref<8x144xbf16, #tpu.memory_space<vmem>>, vector<8x16xbf16>,
    %c0_20 = arith.constant 0 : index
    %c0_21 = arith.constant 0 : index
    %29 = vector.load %arg11[%c0_20, %c0_21] : memref<8x144xbf16, #tpu.memory_space<vmem>>, vector<8x144xbf16>
    %c0_22 = arith.constant 0 : index
    %c0_23 = arith.constant 0 : index
    %c0_24 = arith.constant 0 : index
    %30 = vector.load %arg5[%c0_22, %c0_23, %c0_24] : memref<3x8x8xbf16, #tpu.memory_space<vmem>>, vector<1x8x8xbf16>
    %31 = vector.shape_cast %30 : vector<1x8x8xbf16> to vector<8x8xbf16>
    %32 = vector.extract_strided_slice %29 {offsets = [0, 124], sizes = [8, 16], strides = [1, 1]} : vector<8x144xbf16> to vector<8x16xbf16>
    %cst_25 = arith.constant dense<0.000000e+00> : vector<8x16xf32>
    %33 = tpu.matmul %31, %32, %cst_25 {dimension_numbers = #tpu.dot_dimension_numbers<[1], [0], [0], [1], [0, 0, 1, 1], [], []>} : vector<8x8xbf16>, vector<8x16xbf16>, vector<8x16xf32> -> vector<8x16xf32>
    %c1_26 = arith.constant 1 : index
    %c0_27 = arith.constant 0 : index
    %c0_28 = arith.constant 0 : index
    %34 = vector.load %arg5[%c1_26, %c0_27, %c0_28] : memref<3x8x8xbf16, #tpu.memory_space<vmem>>, vector<1x8x8xbf16>
    %35 = vector.shape_cast %34 : vector<1x8x8xbf16> to vector<8x8xbf16>
    %36 = vector.extract_strided_slice %29 {offsets = [0, 126], sizes = [8, 16], strides = [1, 1]} : vector<8x144xbf16> to vector<8x16xbf16>
    %cst_29 = arith.constant dense<0.000000e+00> : vector<8x16xf32>
    %37 = tpu.matmul %35, %36, %cst_29 {dimension_numbers = #tpu.dot_dimension_numbers<[1], [0], [0], [1], [0, 0, 1, 1], [], []>} : vector<8x8xbf16>, vector<8x16xbf16>, vector<8x16xf32> -> vector<8x16xf32>
    %38 = arith.addf %33, %37 : vector<8x16xf32>
    %c2_30 = arith.constant 2 : index
    %c0_31 = arith.constant 0 : index
    %c0_32 = arith.constant 0 : index
    %39 = vector.load %arg5[%c2_30, %c0_31, %c0_32] : memref<3x8x8xbf16, #tpu.memory_space<vmem>>, vector<1x8x8xbf16>
    %40 = vector.shape_cast %39 : vector<1x8x8xbf16> to vector<8x8xbf16>
    %41 = vector.extract_strided_slice %29 {offsets = [0, 128], sizes = [8, 16], strides = [1, 1]} : vector<8x144xbf16> to vector<8x16xbf16>
    %cst_33 = arith.constant dense<0.000000e+00> : vector<8x16xf32>
    %42 = tpu.matmul %40, %41, %cst_33 {dimension_numbers = #tpu.dot_dimension_numbers<[1], [0], [0], [1], [0, 0, 1, 1], [], []>} : vector<8x8xbf16>, vector<8x16xbf16>, vector<8x16xf32> -> vector<8x16xf32>
    %43 = arith.addf %38, %42 : vector<8x16xf32>
    %c0_34 = arith.constant 0 : index
    %c0_35 = arith.constant 0 : index
    %44 = vector.load %arg6[%c0_34, %c0_35] : memref<8x1xf32, #tpu.memory_space<vmem>>, vector<8x1xf32>
    %45 = vector.broadcast %44 : vector<8x1xf32> to vector<8x16xf32>
    %46 = arith.addf %43, %45 : vector<8x16xf32>
    %cst_36 = arith.constant 0.000000e+00 : f32
    %47 = vector.broadcast %cst_36 : f32 to vector<8x16xf32>
    %48 = arith.maximumf %46, %47 : vector<8x16xf32>
    %c0_37 = arith.constant 0 : index
    %c0_38 = arith.constant 0 : index
    %49 = vector.load %arg7[%c0_37, %c0_38] : memref<8x4xbf16, #tpu.memory_space<vmem>>, vector<8x4xbf16>
    %cst_39 = arith.constant dense<0.000000e+00> : vector<8x16xf32>
    %50 = tpu.matmul %49, %5, %cst_39 {dimension_numbers = #tpu.dot_dimension_numbers<[1], [0], [0], [1], [0, 0, 1, 1], [], []>} : vector<8x4xbf16>, vector<4x16xbf16>, vector<8x16xf32> -> vector<8x16xf32>
    %c0_40 = arith.constant 0 : index
    %c0_41 = arith.constant 0 : index
    %51 = vector.load %arg8[%c0_40, %c0_41] : memref<8x1xf32, #tpu.memory_space<vmem>>, vector<8x1xf32>
    %52 = vector.broadcast %51 : vector<8x1xf32> to vector<8x16xf32>
    %53 = arith.addf %50, %52 : vector<8x16xf32>
    %54 = arith.addf %48, %53 : vector<8x16xf32>
    %cst_42 = arith.constant 0.000000e+00 : f32
    %55 = vector.broadcast %cst_42 : f32 to vector<8x16xf32>
    %56 = arith.maximumf %54, %55 : vector<8x16xf32>
    %57 = arith.truncf %56 : vector<8x16xf32> to vector<8x16xbf16>
    %c0_43 = arith.constant 0 : index
    %c0_44 = arith.constant 0 : index
    %c0_45 = arith.constant 0 : index
    %58 = vector.load %arg9[%c0_43, %c0_44, %c0_45] : memref<1x8x16xbf16, #tpu.memory_space<vmem>>, vector<1x8x16xbf16>
    %59 = vector.shape_cast %58 : vector<1x8x16xbf16> to vector<8x16xbf16>
    %60 = vector.shape_cast %57 : vector<8x16xbf16> to vector<1x8x16xbf16>
    tpu.vector_store %arg9[%c0_43, %c0_44, %c0_45], %60 {strides = array<i32>} : memref<1x8x16xbf16, #tpu.memory_space<vmem>>, vector<1x8x16xbf16>,
    %61 = vector.extract_strided_slice %7 {offsets = [0, 16], sizes = [4, 128], strides = [1, 1]} : vector<4x144xbf16> to vector<4x128xbf16>
    %c0_46 = arith.constant 0 : index
    %c0_47 = arith.constant 0 : index
    %62 = vector.load %arg10[%c0_46, %c0_47] : memref<4x144xbf16, #tpu.memory_space<vmem>>, vector<4x128xbf16>
    tpu.vector_store %arg10[%c0_46, %c0_47], %61 {strides = array<i32>} : memref<4x144xbf16, #tpu.memory_space<vmem>>, vector<4x128xbf16>,
    %63 = vector.extract_strided_slice %29 {offsets = [0, 16], sizes = [8, 128], strides = [1, 1]} : vector<8x144xbf16> to vector<8x128xbf16>
    %c0_48 = arith.constant 0 : index
    %c0_49 = arith.constant 0 : index
    %64 = vector.load %arg11[%c0_48, %c0_49] : memref<8x144xbf16, #tpu.memory_space<vmem>>, vector<8x128xbf16>
    tpu.vector_store %arg11[%c0_48, %c0_49], %63 {strides = array<i32>} : memref<8x144xbf16, #tpu.memory_space<vmem>>, vector<8x128xbf16>,
    return
  }
  func.func @transform_0(%arg0: i32, %arg1: i32) -> (i32, i32, i32) {
    %c0_i32 = arith.constant 0 : i32
    %c0_i32_0 = arith.constant 0 : i32
    return %arg0, %c0_i32, %arg1 : i32, i32, i32
  }
  func.func @transform_1(%arg0: i32, %arg1: i32) -> (i32, i32, i32) {
    %c0_i32 = arith.constant 0 : i32
    %c0_i32_0 = arith.constant 0 : i32
    %c0_i32_1 = arith.constant 0 : i32
    %c0_i32_2 = arith.constant 0 : i32
    return %c0_i32, %c0_i32_0, %c0_i32_1 : i32, i32, i32
  }
  func.func @transform_2(%arg0: i32, %arg1: i32) -> (i32, i32) {
    %c0_i32 = arith.constant 0 : i32
    %c0_i32_0 = arith.constant 0 : i32
    %c0_i32_1 = arith.constant 0 : i32
    return %c0_i32, %c0_i32_0 : i32, i32
  }
  func.func @transform_3(%arg0: i32, %arg1: i32) -> (i32, i32, i32) {
    %c0_i32 = arith.constant 0 : i32
    %c0_i32_0 = arith.constant 0 : i32
    %c0_i32_1 = arith.constant 0 : i32
    %c0_i32_2 = arith.constant 0 : i32
    return %c0_i32, %c0_i32_0, %c0_i32_1 : i32, i32, i32
  }
  func.func @transform_4(%arg0: i32, %arg1: i32) -> (i32, i32) {
    %c0_i32 = arith.constant 0 : i32
    %c0_i32_0 = arith.constant 0 : i32
    %c0_i32_1 = arith.constant 0 : i32
    return %c0_i32, %c0_i32_0 : i32, i32
  }
  func.func @transform_5(%arg0: i32, %arg1: i32) -> (i32, i32) {
    %c0_i32 = arith.constant 0 : i32
    %c0_i32_0 = arith.constant 0 : i32
    %c0_i32_1 = arith.constant 0 : i32
    return %c0_i32, %c0_i32_0 : i32, i32
  }
  func.func @transform_6(%arg0: i32, %arg1: i32) -> (i32, i32) {
    %c0_i32 = arith.constant 0 : i32
    %c0_i32_0 = arith.constant 0 : i32
    %c0_i32_1 = arith.constant 0 : i32
    return %c0_i32, %c0_i32_0 : i32, i32
  }
  func.func @transform_7(%arg0: i32, %arg1: i32) -> (i32, i32, i32) {
    %c0_i32 = arith.constant 0 : i32
    %c0_i32_0 = arith.constant 0 : i32
    return %arg0, %c0_i32, %arg1 : i32, i32, i32
  }
}

</mosaic_0001>

<bundles_post_ra>
// kernel: tpu_custom_call.1
= control target key start
LH: loop header
LB: loop body
LE: loop exit
PB: predicated region body
PF: predicated region fallthrough
CT: control target
= control target key end

     0   :  { %12 = vsyncpa [#allocation5], 0  ;;  %s1270_s0 = inlined_call_operand.vmem [shape: f32[2,4,16], index: 0, kind: input, shape index: {}]   ;;  %s1271_s1 = inlined_call_operand.vmem [shape: bf16[3,8,4], index: 1, kind: input, shape index: {}]   ;;  %s1272_s2 = inlined_call_operand.vmem [shape: f32[8,1], index: 2, kind: input, shape index: {}]   ;;  %s1273_s3 = inlined_call_operand.vmem [shape: bf16[3,8,8], index: 3, kind: input, shape index: {}]   ;;  %s1274_s4 = inlined_call_operand.vmem [shape: f32[8,1], index: 4, kind: input, shape index: {}]   ;;  %s1275_s5 = inlined_call_operand.vmem [shape: bf16[8,4], index: 5, kind: input, shape index: {}]   ;;  %s1276_s6 = inlined_call_operand.vmem [shape: f32[8,1], index: 6, kind: input, shape index: {}]   ;;  %s1277_s7 = inlined_call_operand.hbm [shape: bf16[2,8,16], index: 7, kind: output, shape index: {}]  }
   0x1   :  { %14 = vsyncpa [#allocation5 + $0x1], 0  ;;  %s1087_s24 = smov 0   ;;  %s1089_s25 = smov 0  }
   0x2   :  { %s1091_s26 = smov 0   ;;  %s1093_s27 = smov 0  }
   0x3   :  { %s1095_s28 = smov 0   ;;  %s1097_s29 = smov 0  }
   0x4 LB: > { %s815_s30 = sadd.s32 4294967295, %s1037_s29   ;;  %s816_s8 = sadd.s32 4294967294, %s1037_s29   ;;  %s1037_s29 = sphi %s1097_s29, %s20_s29   ;;  %s1033_s28 = sphi %s1095_s28, %s1284_s28   ;;  %s1029_s27 = sphi %s1093_s27, %s1283_s27   ;;  %s1025_s26 = sphi %s1091_s26, %s1282_s26   ;;  %s1021_s25 = sphi %s1089_s25, %s1281_s25   ;;  %s1017_s24 = sphi %s1087_s24, %s1280_s24  }
   0x5   : > { %s32_s9 = sadd.s32 1, %s1033_s28  ;;  %s195_s10 = sadd.s32 1, %s1025_s26 }
   0x6   : > { %p34_p0 = scmp.ge.s32.totalorder %s32_s9, 2  ;;  %p205_p1 = scmp.ne.s32.totalorder %s1025_s26, %s1021_s25 }
   0x7   : > { %p206_p2 = scmp.eq.s32.totalorder %s815_s30, 1  ;;  %p211_p3 = scmp.ne.s32.totalorder %s1021_s25, %s1017_s24 }
   0x8   : > { %s1286_s9 = smov (%p34_p0, %s32_s9), 0  ;;  %p212_p5 = scmp.eq.s32.totalorder %s816_s8, 1 }
   0x9   : > { %p1127_p4 = por %p206_p2, %p205_p1  ;;  %s190_s12 = ssub.s32 %s1033_s28, %s1286_s9 }
   0xa   : > { %p819_p6 = scmp.ge.s32.totalorder %s1037_s29, 1  ;;  %p193_p7 = scmp.eq.s32.totalorder %s190_s12, 0 }
   0xb   : > { %p1134_p8 = por %p212_p5, %p211_p3  ;;  %p258_p9 = scmp.lt.s32.totalorder %s1037_s29, 3 }
   0xc   : > { %s1140_s14 = scalar_select %p193_p7, %s1025_s26, %s195_s10  }
   0xd   : > { %p259_p10 = pnand %p819_p6, %p258_p9 }
   0xe   : > { %p292_p11 = scmp.lt.s32.totalorder (!%p259_p10), %s1029_s27, 1  ;;  %s1043_s20 = smov (!%p259_p10), 4  }
   0xf   : > { %262 = sbr.rel (%p259_p10) target bundleno = 730 (0x2da), region = 48  ;;  %s1044_s21 = smov (!%p259_p10), 2  }
  0x10   : > { %s289_s17 = sand.u32 (!%p259_p10), 1, %s1021_s25   ;;  %s1046_s12 = smov (!%p259_p10), [#allocation4]  }
  0x11   : > { %s820_s18 = sshll.u32 (!%p259_p10), %s289_s17, 2  ;;  %s730_s8 = scalar_lea.sflag (!%p259_p10), [#allocation5], %s289_s17 }
  0x12   : > { %s291_s22 = scalar_lea.vmem (!%p259_p10), [#allocation4], %s820_s18 }
  0x13   : > { %s744_s23 = sshll.u32 (!%p259_p10), %s291_s22, 4  ;;  %s745_s23 = int_to_ptr.vmem [resolvable:$true] %s744_s23 }
  0x14   : > { %v1039_v0 = vmov 0   ;;  %s293_s15 = scalar_select %p292_p11, %s1029_s27, 1  ;;  %v1040_v1 = vmov 1983009808   ;;  %v318_v3 = vlaneseq  ;;  %vm308_vm0 = vcmask 123904   ;;  %v478_v13 = vld [vmem:[%s1272_s2] sm:$0xff] }
  0x15   : > { %304 = vst [vmem:[#allocation2] sm:$0x3] %v1039_v0  ;;  %305 = vst [vmem:[#allocation3] sm:$0xf] %v1039_v0  ;;  %957 = vset.pattern.permute.xlu0 %v1039_v0  ;;  %958 = vset.pattern.permute.xlu1 %v1039_v0  ;;  %v316_v2 = vunpack.c.l.s4 %v1040_v1  ;;  %v1041_v8 = vmov 0.0   ;;  %vm1042_vm1 = vmmov 0  }
  0x16   : > { %s821_s16 = sshll.u32 %s293_s15, 2  ;;  %v319_v7 = vshrl.u32 %v318_v3, 7  ;;  %853 = vmatprep.subr.bf16.mxu0 %v1041_v8  ;;  %859 = vmatprep.subr.bf16.mxu1 %v1041_v8  ;;  %vm327_vm2 = vcmask 15360   ;;  %vm329_vm3 = vcmask 31744   ;;  %vm333_vm4 = vcmask 1041408   ;;  %v651_v46 = vld [vmem:[%s1274_s4] sm:$0xff] }
  0x17   : > { %s298_s19 = scalar_lea.vmem %s1270_s0, %s821_s16  ;;  %v317_v6 = vunpack.c.0.s8 %v316_v2  ;;  %855 = vmatprep.mubr.msk.bf16.mxu0 %vm1042_vm1, %v1041_v8  ;;  %861 = vmatprep.mubr.msk.bf16.mxu1 %vm1042_vm1, %v1041_v8  ;;  %v822_v22 = vld [vmem:[%s1271_s1 + $0x4] sm:$0xf]  ;;  %v311_v23 = vld [vmem:[%s1271_s1] sm:$0xf]  ;;  %v825_v25 = vld [vmem:[%s1271_s1 + $0x8] sm:$0xf] }
  0x18   : > { %v306_v4 = vld [vmem:[%s298_s19] sm:$0xf]  ;;  %vm487_vm5 = vcmask 125952   ;;  %s1045_s19 = smov 112   ;;  %vm507_vm6 = vcmask 1043456   ;;  %vm503_vm7 = vcmask 64512  }
  0x19   : > { %v1147_v5 = vpack.c.bf16 %v306_v4, %v306_v4  ;;  %v320_v9 = vsub.s32 %v317_v6, %v319_v7  ;;  %v660_v48 = vld [vmem:[%s1276_s6] sm:$0xff]  ;;  %v832_v61 = vld [vmem:[%s1273_s3 + $0x8] sm:$0xf]  ;;  %vm719_vm8 = vcmask 916480   ;;  %s961_s10 = scalar_lea.vmem %s745_s23, 64 }
  0x1a   : > { %v827_v53 = vld [vmem:[%s1273_s3 + $0x4] sm:$0xf]  ;;  %v490_v59 = vld [vmem:[%s1273_s3] sm:$0xf]  ;;  %p962_p12 = scmp.ne.s32.totalorder %s745_s23, %s961_s10 }
  0x1b   : > { %309 = vst.msk [vmem:[#allocation2 + $0x2] sm:$0x3] %vm308_vm0, %v1147_v5  ;;  %v670_v60 = vsel %vm333_vm4, %v1147_v5, 0  ;;  %v659_v62 = vld [vmem:[%s1275_s5] sm:$0xf] }
  0x1c   : > { %p963_p13 = pnand %p962_p12, %p1127_p4 }
  0x1e   : > { %p964_p0 = pneg %p963_p13 }
  0x22   : > { %v1156_v10 = vld [vmem:[#allocation2] sm:$0xf] }
  0x23   : > { %v321_v11 = vrot.slane %v1156_v10, %v320_v9 }
  0x25   : > { %377 = vrot.lane.b32.xlu1 %v321_v11, %s1043_s20  ;;  %323 = vrot.lane.b32.xlu0 %v321_v11, %s1044_s21  ;;  %v322_v12 = vcombine.high %v321_v11, %v321_v11 }
  0x27   : > { %v435_v24 = vsel %vm333_vm4, %v322_v12, 0 }
  0x29   : > { %379 = vrot.lane.b32.xlu1 %v322_v12, %s1043_s20  ;;  %325 = vrot.lane.b32.xlu0 %v322_v12, %s1044_s21 }
  0x2d   : > { %481 = vperm.xlu0 %957, %v478_v13  }
  0x97   : > { %v378_v14 = vpop.permute.xlu1 %377  ;;  %v324_v15 = vpop.permute.xlu0 %323 }
  0x9b   : > { %v380_v16 = vpop.permute.xlu1 %379  ;;  %v326_v17 = vpop.permute.xlu0 %325 }
  0x9c   : > { %v328_v18 = vsel %vm327_vm2, %v324_v15, %v326_v17  ;;  %v382_v19 = vsel %vm329_vm3, %v378_v14, %v380_v16 }
  0x9d   : > { %v335_v20 = vsel %vm333_vm4, %v328_v18, 0  ;;  %v387_v21 = vsel %vm333_vm4, %v382_v19, 0 }
  0x9e   : > { %854 = vmatpush3.bf16.msra.mxu0 %v335_v20  ;;  %860 = vmatpush3.bf16.msra.mxu1 %v387_v21 }
  0x9f   : > { %865 = vmatprep.subr.bf16.mxu0 %v1041_v8  ;;  %871 = vmatprep.subr.bf16.mxu1 %v1041_v8 }
  0xa1   : > { %856 = vmatmul.mubr.msk.bf16.vlgmr.msra.gmra.mxu0 %vm329_vm3, %v822_v22  ;;  %862 = vmatmul.mubr.msk.bf16.vlgmr.msra.gmra.mxu1 %vm329_vm3, %v311_v23 }
  0xa2   : > { %866 = vmatpush3.bf16.msra.mxu0 %v435_v24  ;;  %867 = vmatprep.mubr.msk.bf16.mxu0 %vm1042_vm1, %v1041_v8 }
  0xa3   : > { %873 = vmatprep.mubr.msk.bf16.mxu1 %vm1042_vm1, %v1041_v8  ;;  %877 = vmatprep.subr.bf16.mxu0 %v1041_v8 }
  0xa8   : > { %v482_v36 = vpop.permute.xlu0 %481 }
  0xa9   : > { %868 = vmatmul.mubr.msk.bf16.vlgmr.msra.gmra.mxu0 %vm329_vm3, %v825_v25 }
  0xaa   : > { %879 = vmatprep.mubr.msk.bf16.mxu0 %vm1042_vm1, %v1041_v8 }
 0x161   : > { %v371_v26 = vpop.f32.mrf.mxu0  ;;  %v423_v27 = vpop.f32.mrf.mxu1 }
 0x162   : > { %v424_v34 = vadd.f32 %v423_v27, %v371_v26 }
 0x163   : > { %v857_v28 = vpop.f32.mrf.mxu0  ;;  %v863_v29 = vpop.f32.mrf.mxu1 }
 0x165   : > { %v374_v30 = vpop.f32.mrf.mxu0  ;;  %v426_v31 = vpop.f32.mrf.mxu1 }
 0x167   : > { %v858_v32 = vpop.f32.mrf.mxu0  ;;  %v864_v33 = vpop.f32.mrf.mxu1 }
 0x169   : > { %v471_v35 = vpop.f32.mrf.mxu0 }
 0x16a   : > { %v477_v37 = vadd.f32 %v471_v35, %v424_v34 }
 0x16b   : > { %v869_v38 = vpop.f32.mrf.mxu0 }
 0x16c   : > { %v484_v39 = vadd.f32 %v482_v36, %v477_v37 }
 0x16d   : > { %v474_v40 = vpop.f32.mrf.mxu0 }
 0x16e   : > { %v485_v41 = vmax.f32 %v484_v39, 0.0 }
 0x16f   : > { %v870_v42 = vpop.f32.mrf.mxu0 }
 0x170   : > { %v486_v43 = vpack.c.bf16 %v485_v41, %v485_v41 }
 0x172   : > { %488 = vst.msk [vmem:[#allocation3 + $0x4] sm:$0xf] %vm487_vm5, %v486_v43 }
 0x179   : > { %v489_v44 = vld [vmem:[#allocation3] sm:$0xff] }
 0x17a   : > { %v828_v45 = vcombine.low %v489_v44, %v489_v44  ;;  %v829_v47 = vcombine.high %v489_v44, %v489_v44 }
 0x17c   : > { %551 = vrot.lane.b32.xlu0 %v828_v45, %s1043_s20  ;;  %498 = vrot.lane.b32.xlu1 %v828_v45, %s1044_s21  ;;  %v608_v58 = vsel %vm507_vm6, %v829_v47, 0 }
 0x180   : > { %654 = vperm.xlu0 %957, %v651_v46   ;;  %500 = vrot.lane.b32.xlu1 %v829_v47, %s1044_s21 }
 0x184   : > { %553 = vrot.lane.b32.xlu1 %v829_v47, %s1043_s20  ;;  %716 = vrot.lane.b32.xlu0 %v1156_v10, %s1045_s19 }
 0x188   : > { %663 = vperm.xlu1 %958, %v660_v48  }
 0x18c   : > { %723 = vrot.lane.b32.xlu1 %v489_v44, %s1045_s19  ;;  %s836_s19 = sshll.u32 %s1029_s27, 6  ;;  %s965_s27 = sshll.u32 %s1046_s12, 4  ;;  %s966_s27 = int_to_ptr.vmem [resolvable:$false] %s965_s27 }
 0x18d   : > { %s742_s20 = scalar_lea.hbm %s1277_s7, %s836_s19  ;;  %s967_s15 = scalar_lea.vmem %s966_s27, 128 }
 0x18e   : > { %p968_p1 = scmp.lt.s32.totalorder %s745_s23, %s966_s27  ;;  %p969_p2 = scmp.lt.s32.totalorder %s967_s15, %s961_s10 }
 0x190   : > { %p970_p3 = por %p969_p2, %p968_p1 }
 0x192   : > { %p971_p5 = pnand %p970_p3, %p964_p0 }
 0x1ee   : > { %v499_v49 = vpop.permute.xlu1 %498  ;;  %v552_v54 = vpop.permute.xlu0 %551 }
 0x1f2   : > { %v501_v50 = vpop.permute.xlu1 %500 }
 0x1f3   : > { %v502_v51 = vsel %vm327_vm2, %v499_v49, %v501_v50 }
 0x1f4   : > { %v509_v52 = vsel %vm507_vm6, %v502_v51, 0 }
 0x1f5   : > { %872 = vmatpush3.bf16.msra.mxu1 %v509_v52 }
 0x1f6   : > { %v554_v55 = vpop.permute.xlu1 %553  ;;  %883 = vmatprep.subr.bf16.mxu1 %v1041_v8 }
 0x1f7   : > { %v555_v56 = vsel %vm329_vm3, %v552_v54, %v554_v55 }
 0x1f8   : > { %v560_v57 = vsel %vm507_vm6, %v555_v56, 0  ;;  %874 = vmatmul.mubr.msk.bf16.vlgmr.msra.gmra.mxu1 %vm503_vm7, %v827_v53 }
 0x1f9   : > { %878 = vmatpush3.bf16.msra.mxu0 %v560_v57  ;;  %884 = vmatpush3.bf16.msra.mxu1 %v608_v58 }
 0x1fa   : > { %885 = vmatprep.mubr.msk.bf16.mxu1 %vm1042_vm1, %v1041_v8  ;;  %889 = vmatprep.subr.bf16.mxu0 %v1041_v8 }
 0x1fb   : > { %v655_v3 = vpop.permute.xlu0 %654 }
 0x1fc   : > { %880 = vmatmul.mubr.msk.bf16.vlgmr.msra.gmra.mxu0 %vm503_vm7, %v490_v59 }
 0x1fd   : > { %890 = vmatpush3.bf16.msra.mxu0 %v670_v60  ;;  %891 = vmatprep.mubr.msk.bf16.mxu0 %vm1042_vm1, %v1041_v8 }
 0x1ff   : > { %v717_v4 = vpop.permute.xlu0 %716 }
 0x200   : > { %886 = vmatmul.mubr.msk.bf16.vlgmr.msra.gmra.mxu1 %vm503_vm7, %v832_v61  ;;  %v718_v5 = vrot.slane %v717_v4, 2 }
 0x202   : > { %v720_v6 = vsel %vm719_vm8, %v717_v4, %v718_v5 }
 0x203   : > { %v664_v63 = vpop.permute.xlu1 %663  ;;  %722 = vst [vmem:[#allocation2] sm:$0x3] %v720_v6 }
 0x204   : > { %892 = vmatmul.mubr.msk.bf16.vlgmr.msra.gmra.mxu0 %vm329_vm3, %v659_v62 }
 0x207   : > { %v724_v0 = vpop.permute.xlu1 %723 }
 0x208   : > { %v725_v1 = vrot.slane %v724_v0, 4 }
 0x20a   : > { %v726_v2 = vsel %vm719_vm8, %v724_v0, %v725_v1 }
 0x20b   : > { %728 = vst [vmem:[#allocation3] sm:$0xf] %v726_v2 }
 0x2b8   : > { %v545_v7 = vpop.f32.mrf.mxu1 }
 0x2ba   : > { %v875_v8 = vpop.f32.mrf.mxu1 }
 0x2bc   : > { %v548_v9 = vpop.f32.mrf.mxu1  ;;  %v596_v10 = vpop.f32.mrf.mxu0 }
 0x2bd   : > { %v597_v13 = vadd.f32 %v596_v10, %v545_v7 }
 0x2be   : > { %v876_v11 = vpop.f32.mrf.mxu1  ;;  %v881_v12 = vpop.f32.mrf.mxu0 }
 0x2c0   : > { %v599_v14 = vpop.f32.mrf.mxu0  ;;  %v644_v15 = vpop.f32.mrf.mxu1 }
 0x2c1   : > { %v650_v16 = vadd.f32 %v644_v15, %v597_v13 }
 0x2c2   : > { %v882_v17 = vpop.f32.mrf.mxu0  ;;  %v887_v18 = vpop.f32.mrf.mxu1 }
 0x2c3   : > { %v657_v19 = vadd.f32 %v655_v3, %v650_v16 }
 0x2c4   : > { %v647_v20 = vpop.f32.mrf.mxu1  ;;  %v706_v21 = vpop.f32.mrf.mxu0 }
 0x2c5   : > { %v658_v22 = vmax.f32 %v657_v19, 0.0  ;;  %v707_v23 = vadd.f32 %v706_v21, %v664_v63 }
 0x2c6   : > { %v888_v24 = vpop.f32.mrf.mxu1  ;;  %v893_v25 = vpop.f32.mrf.mxu0 }
 0x2c7   : > { %v712_v26 = vadd.f32 %v707_v23, %v658_v22 }
 0x2c8   : > { %v709_v27 = vpop.f32.mrf.mxu0 }
 0x2c9   : > { %v713_v28 = vmax.f32 %v712_v26, 0.0 }
 0x2ca   : > { %v894_v29 = vpop.f32.mrf.mxu0 }
 0x2cb   : > { %v714_v30 = vpack.c.bf16 %v713_v28, %v713_v28 }
 0x2cd   : > { %715 = vst.msk [vmem:[%s291_s22] sm:$0xf] %vm487_vm5, %v714_v30 }
 0x2ce   : > { %974 = shalt.err (!%p971_p5)
}
 0x2cf   : > { %s975_s16 = scalar_lea.hbm %s742_s20, 64  ;;  %s979_s19 = scalar_lea.hbm %s1277_s7, 128 }
 0x2d0   : > { %p976_p6 = scmp.ne.s32.totalorder %s742_s20, %s975_s16  ;;  %p980_p10 = scmp.lt.s32.totalorder %s742_s20, %s1277_s7 }
 0x2d1   : > { %p981_p11 = scmp.lt.s32.totalorder %s979_s19, %s975_s16 }
 0x2d2   : > { %p977_p7 = pnand %p976_p6, %p1127_p4 }
 0x2d3   : > { %p982_p12 = por %p981_p11, %p980_p10 }
 0x2d4   : > { %p978_p9 = pneg %p977_p7 }
 0x2d6   : > { %p983_p13 = pnand %p982_p12, %p978_p9 }
 0x2d8   : > { %986 = shalt.err (!%p983_p13)
}
 0x2d9   : > { %895 = dma.vmem_to_hbm [thread:$0]  (%p1127_p4), %s745_s23, 64, %s742_s20, %s730_s8  }
 0x2da PF: > { %p901_p0 = scmp.ge.s32.totalorder %s1037_s29, 2  ;;  %s756_s21 = sand.u32 1, %s1017_s24  }
 0x2db   : > { %s757_s10 = scalar_lea.sflag [#allocation5], %s756_s21 }
 0x2dc   : > { %p898_p1 = pnand %p901_p0, %p1134_p8 }
 0x2de   : > { %p899_p2 = pneg %p898_p1 }
 0x2e0   : > { %1012 = dma.done.wait (%p899_p2), %s757_s10, 64  }
 0x2e1   : > { %1014 = vsyncadd (%p899_p2), %s757_s10, 4294967232  ;;  %s20_s29 = sadd.s32 1, %s1037_s29   ;;  %s1280_s24 = smov %s1021_s25 }
 0x2e2   : > { %p17_p3 = scmp.ge.s32.totalorder %s20_s29, 4   ;;  %s1281_s25 = smov %s1025_s26 }
 0x2e3   : > { %s1282_s26 = smov %s1140_s14  ;;  %s1283_s27 = smov %s1033_s28 }
 0x2e4   : > { %s1284_s28 = smov %s1286_s9  ;;  %19 = sbr.rel (!%p17_p3) target bundleno = 4 (0x4), region = 91 }
 0x2e9   :  { %762 = vsyncpa [#allocation5], 1 }
 0x2ea   :  { %764 = vsyncpa [#allocation5 + $0x1], 1 }

</bundles_post_ra>
